<compile_context>
chip_gen: v5e
topology: v5e:2x2
jax: 0.10.0
libtpu: 0.0.40
codegen_flags: <defaults>
</compile_context>

<pallas_src>
import functools

import jax
import jax.numpy as jnp
from jax.experimental import pallas as pl
from jax.experimental.pallas import tpu as pltpu


def _round_up(v, m):
    return (v + m - 1) // m * m


# ----------------------------------------------------------------------------
# Kernel
# ----------------------------------------------------------------------------
def _proj_head_kernel(x_ref, w1ws_ref, b1bs_ref, w2_ref, b2_ref,
                      w3_ref, b3_ref, o_ref, *, out_dim_p):
    """One batch tile per grid step: fused MLP(3xLinear+ReLU) + linear shortcut."""
    # In-kernel cast (x streamed from HBM in its original dtype).
    x = x_ref[...].astype(w1ws_ref.dtype)                       # (bm, in_dim)

    # Single MXU pass over x feeds both layer 1 and the shortcut: [W1 | Ws].
    r = jnp.dot(x, w1ws_ref[...], preferred_element_type=jnp.float32)
    r = r + b1bs_ref[...]                                       # (bm, 2P) f32
    h = jnp.maximum(r[:, :out_dim_p], 0.0)                      # ReLU(x@W1 + b1)
    s = r[:, out_dim_p:]                                        # x@Ws + bs

    h = jnp.dot(h.astype(w2_ref.dtype), w2_ref[...],
                preferred_element_type=jnp.float32) + b2_ref[...]
    h = jnp.maximum(h, 0.0)

    h = jnp.dot(h.astype(w3_ref.dtype), w3_ref[...],
                preferred_element_type=jnp.float32) + b3_ref[...]
    h = jnp.maximum(h, 0.0)

    y = h + s                                                   # (bm, P) f32
    # Output ref may be narrower than P (un-padded small out_dim path).
    o_ref[...] = y[:, : o_ref.shape[-1]].astype(o_ref.dtype)


# ----------------------------------------------------------------------------
# One-time parameter packing (hoisted out of the per-call path)
# ----------------------------------------------------------------------------
def pack_params(params, compute_dtype=jnp.bfloat16):
    """Pad/concat/cast weights once.  Returns (packed_dict, out_dim).

    Weights in `params` are stored pre-transposed as (fan_in, fan_out).
    Zero padding of rows/cols keeps the math exact; padded output columns are
    exactly zero."""
    out_dim = int(params["w1"].shape[1])
    out_dim_p = _round_up(out_dim, 128)

    def pad_cols(a):
        return jnp.pad(a, ((0, 0), (0, out_dim_p - a.shape[1])))

    def pad_sq(a):
        return jnp.pad(a, ((0, out_dim_p - a.shape[0]), (0, out_dim_p - a.shape[1])))

    def pad_bias(b):
        return jnp.pad(b, (0, out_dim_p - b.shape[0])).astype(jnp.float32)

    packed = dict(
        w1ws=jnp.concatenate([pad_cols(params["w1"]), pad_cols(params["ws"])],
                             axis=1).astype(compute_dtype),           # (in, 2P)
        b1bs=jnp.concatenate([pad_bias(params["b1"]),
                              pad_bias(params["bs"])]).reshape(1, 2 * out_dim_p),
        w2=pad_sq(params["w2"]).astype(compute_dtype),                # (P, P)
        b2=pad_bias(params["b2"]).reshape(1, out_dim_p),
        w3=pad_sq(params["w3"]).astype(compute_dtype),                # (P, P)
        b3=pad_bias(params["b3"]).reshape(1, out_dim_p),
    )
    return packed, out_dim


# ----------------------------------------------------------------------------
# Per-generation tuning
# ----------------------------------------------------------------------------
def _tpu_config():
    try:
        kind = jax.devices()[0].device_kind.lower()
    except Exception:  # pragma: no cover - defensive
        kind = ""
    if "v7" in kind:
        # v7x: 64 MiB VMEM per TensorCore, 2 TensorCores/chip -> smaller tiles,
        # make sure the parallel grid has >= 2 blocks so both cores get work.
        return dict(vmem_limit=32 * 1024 * 1024,
                    vmem_budget=24 * 1024 * 1024,
                    max_block_rows=512,
                    min_blocks=2)
    # v5e / v6e: 128 MiB physical VMEM, single TensorCore -> bigger tiles.
    return dict(vmem_limit=64 * 1024 * 1024,
                vmem_budget=48 * 1024 * 1024,
                max_block_rows=1024,
                min_blocks=1)


def _choose_block_rows(n, input_dim, out_dim_p, out_cols,
                       x_itemsize, w_itemsize, out_itemsize, cfg):
    """Pick the largest batch tile whose VMEM footprint fits the budget."""
    # Weights budgeted conservatively at 2 buffers (fallback path).
    weight_bytes = (2 * w_itemsize * (input_dim * 2 * out_dim_p
                                      + 2 * out_dim_p * out_dim_p)
                    + 2 * 4 * (4 * out_dim_p))                  # biases, f32
    bm = 8
    cand = cfg["max_block_rows"]
    while cand >= 8:
        per_tile = (2 * cand * input_dim * x_itemsize           # x tile, 2 bufs
                    + 2 * cand * out_cols * out_itemsize        # out tile, 2 bufs
                    + cand * 2 * out_dim_p * 4                  # r (f32)
                    + 2 * cand * out_dim_p * 4)                 # h temporaries
        if weight_bytes + per_tile <= cfg["vmem_budget"]:
            bm = cand
            break
        cand //= 2
    # Don't over-pad tiny batches.
    bm = min(bm, max(8, _round_up(n, 8)))
    # v7x: split the batch so both TensorCores get at least one block.
    if cfg["min_blocks"] > 1 and n > 8:
        bm = min(bm, max(8, _round_up(pl.cdiv(n, cfg["min_blocks"]), 8)))
    return bm


# ----------------------------------------------------------------------------
# Forward
# ----------------------------------------------------------------------------
@functools.partial(
    jax.jit,
    static_argnames=("out_dim", "block_rows", "weight_buffers",
                     "vmem_limit_bytes", "pad_output", "out_dtype"))
def _proj_head_forward(x, w1ws, b1bs, w2, b2, w3, b3, *, out_dim, block_rows,
                       weight_buffers, vmem_limit_bytes, pad_output, out_dtype):
    n, input_dim = x.shape
    out_dim_p = w2.shape[0]
    out_cols = out_dim_p if pad_output else out_dim

    num_blocks = pl.cdiv(n, block_rows)
    n_pad = num_blocks * block_rows
    # Batch pad only when the tile does not divide N (no extra HBM pass otherwise).
    x_p = x if n_pad == n else jnp.pad(x, ((0, n_pad - n), (0, 0)))

    w_itemsize = jnp.dtype(w1ws.dtype).itemsize
    flops = 2 * n_pad * (input_dim * 2 * out_dim_p + 2 * out_dim_p * out_dim_p)
    bytes_accessed = (n_pad * input_dim * x.dtype.itemsize
                      + n_pad * out_cols * jnp.dtype(out_dtype).itemsize
                      + (w1ws.size + w2.size + w3.size) * w_itemsize
                      + (b1bs.size + b2.size + b3.size) * 4)

    def w_spec(shape):
        # Constant-index weight/bias blocks: single-buffer when supported.
        if weight_buffers:
            return pl.BlockSpec(shape, lambda i: (0, 0),
                                pipeline_mode=pl.Buffered(weight_buffers))
        return pl.BlockSpec(shape, lambda i: (0, 0))

    out = pl.pallas_call(
        functools.partial(_proj_head_kernel, out_dim_p=out_dim_p),
        out_shape=jax.ShapeDtypeStruct((n_pad, out_cols), out_dtype),
        grid=(num_blocks,),
        in_specs=[
            pl.BlockSpec((block_rows, input_dim), lambda i: (i, 0)),  # x tile
            w_spec(w1ws.shape), w_spec(b1bs.shape),
            w_spec(w2.shape), w_spec(b2.shape),
            w_spec(w3.shape), w_spec(b3.shape),
        ],
        out_specs=pl.BlockSpec((block_rows, out_cols), lambda i: (i, 0)),
        compiler_params=pltpu.CompilerParams(
            dimension_semantics=("parallel",),
            vmem_limit_bytes=vmem_limit_bytes),
        cost_estimate=pl.CostEstimate(
            flops=flops, transcendentals=0, bytes_accessed=bytes_accessed),
    )(x_p, w1ws, b1bs, w2, b2, w3, b3)

    # Slice only when padding was actually introduced.
    if n_pad != n or out_cols != out_dim:
        out = out[:n, :out_dim]
    return out


# Lazily resolved: 1 => pl.Buffered(1) weights supported, 0 => default buffering.
_WEIGHT_BUFFERS = None


def proj_head(x, packed, out_dim, *, block_rows=None, out_dtype=None):
    """x: [N, input_dim].  packed: output of pack_params(params)."""
    global _WEIGHT_BUFFERS
    cfg = _tpu_config()
    n, input_dim = x.shape
    out_dim_p = packed["w2"].shape[0]

    # Pad the output to a lane-dense 128-multiple only when the waste is small;
    # for small out_dim write the narrow output directly (fewer HBM bytes,
    # no post-kernel slice pass).
    pad_output = (out_dim * 4 >= out_dim_p * 3)
    out_cols = out_dim_p if pad_output else out_dim
    out_dtype = jnp.dtype(x.dtype) if out_dtype is None else jnp.dtype(out_dtype)

    if block_rows is None:
        block_rows = _choose_block_rows(
            n, input_dim, out_dim_p, out_cols,
            x.dtype.itemsize, jnp.dtype(packed["w1ws"].dtype).itemsize,
            out_dtype.itemsize, cfg)

    args = (x, packed["w1ws"], packed["b1bs"], packed["w2"], packed["b2"],
            packed["w3"], packed["b3"])
    kwargs = dict(out_dim=out_dim, block_rows=block_rows,
                  vmem_limit_bytes=cfg["vmem_limit"],
                  pad_output=pad_output, out_dtype=out_dtype)

    if _WEIGHT_BUFFERS is None:
        try:
            out = _proj_head_forward(*args, weight_buffers=1, **kwargs)
            _WEIGHT_BUFFERS = 1
        except Exception:
            # Older JAX without BlockSpec pipeline_mode / Buffered(1) support.
            _WEIGHT_BUFFERS = 0
            out = _proj_head_forward(*args, weight_buffers=0, **kwargs)
    else:
        out = _proj_head_forward(*args, weight_buffers=_WEIGHT_BUFFERS, **kwargs)
    return out


# ----------------------------------------------------------------------------
# Init + pure-JAX reference
# ----------------------------------------------------------------------------
def init_params(key, input_dim, out_dim):
    """Deterministic init mimicking nn.Linear's U(-1/sqrt(fan_in), 1/sqrt(fan_in)).

    Weights are stored pre-transposed as (fan_in, fan_out)."""
    keys = jax.random.split(key, 8)

    def lin(kw, kb, fan_in, fan_out):
        bound = 1.0 / jnp.sqrt(fan_in)
        w = jax.random.uniform(kw, (fan_in, fan_out), jnp.float32, -bound, bound)
        b = jax.random.uniform(kb, (fan_out,), jnp.float32, -bound, bound)
        return w, b

    w1, b1 = lin(keys[0], keys[1], input_dim, out_dim)
    w2, b2 = lin(keys[2], keys[3], out_dim, out_dim)
    w3, b3 = lin(keys[4], keys[5], out_dim, out_dim)
    ws, bs = lin(keys[6], keys[7], input_dim, out_dim)
    return dict(w1=w1, b1=b1, w2=w2, b2=b2, w3=w3, b3=b3, ws=ws, bs=bs)


def proj_head_ref(x, p):
    """Pure-JAX f32 reference for correctness checking."""
    h = jax.nn.relu(x @ p["w1"] + p["b1"])
    h = jax.nn.relu(h @ p["w2"] + p["b2"])
    h = jax.nn.relu(h @ p["w3"] + p["b3"])
    return h + (x @ p["ws"] + p["bs"])


if __name__ == "__main__":
    key = jax.random.PRNGKey(0)
    k1, k2, k3, k4 = jax.random.split(key, 4)

    # Case 1: small shapes from the module spec (narrow un-padded output path).
    batch, input_dim, out_dim = 8, 32, 16
    x = jax.random.normal(k1, (batch, input_dim), jnp.float32)
    params = init_params(k2, input_dim, out_dim)
    ref = proj_head_ref(x, params)

    packed_f32, od = pack_params(params, compute_dtype=jnp.float32)  # exact path
    out_f32 = jax.block_until_ready(proj_head(x, packed_f32, od))
    assert out_f32.shape == (batch, out_dim)
    assert jnp.allclose(out_f32, ref, atol=1e-4, rtol=1e-4)

    packed_bf16, od = pack_params(params)                            # fast path
    out_bf16 = jax.block_until_ready(proj_head(x, packed_bf16, od))
    assert out_bf16.shape == (batch, out_dim)
    assert jnp.allclose(out_bf16, ref, atol=5e-2, rtol=5e-2)

    # Case 2: ragged batch + lane-dense 128-padded output path.
    batch2, input_dim2, out_dim2 = 70, 40, 112
    x2 = jax.random.normal(k3, (batch2, input_dim2), jnp.float32)
    params2 = init_params(k4, input_dim2, out_dim2)
    ref2 = proj_head_ref(x2, params2)
    packed2, od2 = pack_params(params2, compute_dtype=jnp.float32)
    out2 = jax.block_until_ready(proj_head(x2, packed2, od2))
    assert out2.shape == (batch2, out_dim2)
    assert jnp.allclose(out2, ref2, atol=1e-4, rtol=1e-4)

    print("KERNEL_OK")
</pallas_src>

<mosaic_0001>
module attributes {stable_mosaic.version = 11 : i64} {
  func.func @_proj_head_kernel(%arg0: i32, %arg1: memref<8x32xf32, #tpu.memory_space<vmem>>, %arg2: memref<32x256xf32, #tpu.memory_space<vmem>>, %arg3: memref<1x256xf32, #tpu.memory_space<vmem>>, %arg4: memref<128x128xf32, #tpu.memory_space<vmem>>, %arg5: memref<1x128xf32, #tpu.memory_space<vmem>>, %arg6: memref<128x128xf32, #tpu.memory_space<vmem>>, %arg7: memref<1x128xf32, #tpu.memory_space<vmem>>, %arg8: memref<8x16xf32, #tpu.memory_space<vmem>>) attributes {dimension_semantics = [#tpu.dimension_semantics<parallel>], iteration_bounds = array<i64: 1>, scalar_prefetch = 0 : i64, scratch_operands = 0 : i64, tpu.core_type = #tpu.core_type<tc>, window_params = [{transform_indices = @transform_0, window_bounds = array<i64: 8, 32>}, {pipeline_mode = #tpu.pipeline_mode<synchronous>, transform_indices = @transform_1, window_bounds = array<i64: 32, 256>}, {pipeline_mode = #tpu.pipeline_mode<synchronous>, transform_indices = @transform_2, window_bounds = array<i64: 1, 256>}, {pipeline_mode = #tpu.pipeline_mode<synchronous>, transform_indices = @transform_3, window_bounds = array<i64: 128, 128>}, {pipeline_mode = #tpu.pipeline_mode<synchronous>, transform_indices = @transform_4, window_bounds = array<i64: 1, 128>}, {pipeline_mode = #tpu.pipeline_mode<synchronous>, transform_indices = @transform_5, window_bounds = array<i64: 128, 128>}, {pipeline_mode = #tpu.pipeline_mode<synchronous>, transform_indices = @transform_6, window_bounds = array<i64: 1, 128>}, {transform_indices = @transform_7, window_bounds = array<i64: 8, 16>}]} {
    %c0 = arith.constant 0 : index
    %c0_0 = arith.constant 0 : index
    %0 = vector.load %arg1[%c0, %c0_0] : memref<8x32xf32, #tpu.memory_space<vmem>>, vector<8x32xf32>
    %c0_1 = arith.constant 0 : index
    %c0_2 = arith.constant 0 : index
    %1 = vector.load %arg2[%c0_1, %c0_2] : memref<32x256xf32, #tpu.memory_space<vmem>>, vector<32x256xf32>
    %cst = arith.constant dense<0.000000e+00> : vector<8x256xf32>
    %2 = tpu.matmul %0, %1, %cst {dimension_numbers = #tpu.dot_dimension_numbers<[1], [0], [0], [1], [0, 0, 1, 1], [], []>} : vector<8x32xf32>, vector<32x256xf32>, vector<8x256xf32> -> vector<8x256xf32>
    %c0_3 = arith.constant 0 : index
    %c0_4 = arith.constant 0 : index
    %3 = vector.load %arg3[%c0_3, %c0_4] : memref<1x256xf32, #tpu.memory_space<vmem>>, vector<1x256xf32>
    %4 = vector.broadcast %3 : vector<1x256xf32> to vector<8x256xf32>
    %5 = arith.addf %2, %4 : vector<8x256xf32>
    %6 = vector.extract_strided_slice %5 {offsets = [0, 0], sizes = [8, 128], strides = [1, 1]} : vector<8x256xf32> to vector<8x128xf32>
    %cst_5 = arith.constant 0.000000e+00 : f32
    %7 = vector.broadcast %cst_5 : f32 to vector<8x128xf32>
    %8 = arith.maximumf %6, %7 : vector<8x128xf32>
    %9 = vector.extract_strided_slice %5 {offsets = [0, 128], sizes = [8, 128], strides = [1, 1]} : vector<8x256xf32> to vector<8x128xf32>
    %c0_6 = arith.constant 0 : index
    %c0_7 = arith.constant 0 : index
    %10 = vector.load %arg4[%c0_6, %c0_7] : memref<128x128xf32, #tpu.memory_space<vmem>>, vector<128x128xf32>
    %cst_8 = arith.constant dense<0.000000e+00> : vector<8x128xf32>
    %11 = tpu.matmul %8, %10, %cst_8 {dimension_numbers = #tpu.dot_dimension_numbers<[1], [0], [0], [1], [0, 0, 1, 1], [], []>} : vector<8x128xf32>, vector<128x128xf32>, vector<8x128xf32> -> vector<8x128xf32>
    %c0_9 = arith.constant 0 : index
    %c0_10 = arith.constant 0 : index
    %12 = vector.load %arg5[%c0_9, %c0_10] : memref<1x128xf32, #tpu.memory_space<vmem>>, vector<1x128xf32>
    %13 = vector.broadcast %12 : vector<1x128xf32> to vector<8x128xf32>
    %14 = arith.addf %11, %13 : vector<8x128xf32>
    %cst_11 = arith.constant 0.000000e+00 : f32
    %15 = vector.broadcast %cst_11 : f32 to vector<8x128xf32>
    %16 = arith.maximumf %14, %15 : vector<8x128xf32>
    %c0_12 = arith.constant 0 : index
    %c0_13 = arith.constant 0 : index
    %17 = vector.load %arg6[%c0_12, %c0_13] : memref<128x128xf32, #tpu.memory_space<vmem>>, vector<128x128xf32>
    %cst_14 = arith.constant dense<0.000000e+00> : vector<8x128xf32>
    %18 = tpu.matmul %16, %17, %cst_14 {dimension_numbers = #tpu.dot_dimension_numbers<[1], [0], [0], [1], [0, 0, 1, 1], [], []>} : vector<8x128xf32>, vector<128x128xf32>, vector<8x128xf32> -> vector<8x128xf32>
    %c0_15 = arith.constant 0 : index
    %c0_16 = arith.constant 0 : index
    %19 = vector.load %arg7[%c0_15, %c0_16] : memref<1x128xf32, #tpu.memory_space<vmem>>, vector<1x128xf32>
    %20 = vector.broadcast %19 : vector<1x128xf32> to vector<8x128xf32>
    %21 = arith.addf %18, %20 : vector<8x128xf32>
    %cst_17 = arith.constant 0.000000e+00 : f32
    %22 = vector.broadcast %cst_17 : f32 to vector<8x128xf32>
    %23 = arith.maximumf %21, %22 : vector<8x128xf32>
    %24 = arith.addf %23, %9 : vector<8x128xf32>
    %25 = vector.extract_strided_slice %24 {offsets = [0, 0], sizes = [8, 16], strides = [1, 1]} : vector<8x128xf32> to vector<8x16xf32>
    %c0_18 = arith.constant 0 : index
    %c0_19 = arith.constant 0 : index
    %26 = vector.load %arg8[%c0_18, %c0_19] : memref<8x16xf32, #tpu.memory_space<vmem>>, vector<8x16xf32>
    tpu.vector_store %arg8[%c0_18, %c0_19], %25 {strides = array<i32>} : memref<8x16xf32, #tpu.memory_space<vmem>>, vector<8x16xf32>,
    return
  }
  func.func @transform_0(%arg0: i32) -> (i32, i32) {
    %c0_i32 = arith.constant 0 : i32
    %c0_i32_0 = arith.constant 0 : i32
    return %arg0, %c0_i32 : i32, i32
  }
  func.func @transform_1(%arg0: i32) -> (i32, i32) {
    %c0_i32 = arith.constant 0 : i32
    %c0_i32_0 = arith.constant 0 : i32
    %c0_i32_1 = arith.constant 0 : i32
    return %c0_i32, %c0_i32_0 : i32, i32
  }
  func.func @transform_2(%arg0: i32) -> (i32, i32) {
    %c0_i32 = arith.constant 0 : i32
    %c0_i32_0 = arith.constant 0 : i32
    %c0_i32_1 = arith.constant 0 : i32
    return %c0_i32, %c0_i32_0 : i32, i32
  }
  func.func @transform_3(%arg0: i32) -> (i32, i32) {
    %c0_i32 = arith.constant 0 : i32
    %c0_i32_0 = arith.constant 0 : i32
    %c0_i32_1 = arith.constant 0 : i32
    return %c0_i32, %c0_i32_0 : i32, i32
  }
  func.func @transform_4(%arg0: i32) -> (i32, i32) {
    %c0_i32 = arith.constant 0 : i32
    %c0_i32_0 = arith.constant 0 : i32
    %c0_i32_1 = arith.constant 0 : i32
    return %c0_i32, %c0_i32_0 : i32, i32
  }
  func.func @transform_5(%arg0: i32) -> (i32, i32) {
    %c0_i32 = arith.constant 0 : i32
    %c0_i32_0 = arith.constant 0 : i32
    %c0_i32_1 = arith.constant 0 : i32
    return %c0_i32, %c0_i32_0 : i32, i32
  }
  func.func @transform_6(%arg0: i32) -> (i32, i32) {
    %c0_i32 = arith.constant 0 : i32
    %c0_i32_0 = arith.constant 0 : i32
    %c0_i32_1 = arith.constant 0 : i32
    return %c0_i32, %c0_i32_0 : i32, i32
  }
  func.func @transform_7(%arg0: i32) -> (i32, i32) {
    %c0_i32 = arith.constant 0 : i32
    %c0_i32_0 = arith.constant 0 : i32
    return %arg0, %c0_i32 : i32, i32
  }
}

module attributes {stable_mosaic.version = 11 : i64} {
  func.func @_proj_head_kernel(%arg0: i32, %arg1: memref<8x32xf32, #tpu.memory_space<vmem>>, %arg2: memref<32x256xf32, #tpu.memory_space<vmem>>, %arg3: memref<1x256xf32, #tpu.memory_space<vmem>>, %arg4: memref<128x128xf32, #tpu.memory_space<vmem>>, %arg5: memref<1x128xf32, #tpu.memory_space<vmem>>, %arg6: memref<128x128xf32, #tpu.memory_space<vmem>>, %arg7: memref<1x128xf32, #tpu.memory_space<vmem>>, %arg8: memref<8x16xf32, #tpu.memory_space<vmem>>) attributes {dimension_semantics = [#tpu.dimension_semantics<parallel>], iteration_bounds = array<i64: 1>, scalar_prefetch = 0 : i64, scratch_operands = 0 : i64, tpu.core_type = #tpu.core_type<tc>, window_params = [{transform_indices = @transform_0, window_bounds = array<i64: 8, 32>}, {pipeline_mode = #tpu.pipeline_mode<synchronous>, transform_indices = @transform_1, window_bounds = array<i64: 32, 256>}, {pipeline_mode = #tpu.pipeline_mode<synchronous>, transform_indices = @transform_2, window_bounds = array<i64: 1, 256>}, {pipeline_mode = #tpu.pipeline_mode<synchronous>, transform_indices = @transform_3, window_bounds = array<i64: 128, 128>}, {pipeline_mode = #tpu.pipeline_mode<synchronous>, transform_indices = @transform_4, window_bounds = array<i64: 1, 128>}, {pipeline_mode = #tpu.pipeline_mode<synchronous>, transform_indices = @transform_5, window_bounds = array<i64: 128, 128>}, {pipeline_mode = #tpu.pipeline_mode<synchronous>, transform_indices = @transform_6, window_bounds = array<i64: 1, 128>}, {transform_indices = @transform_7, window_bounds = array<i64: 8, 16>}]} {
    %c0 = arith.constant 0 : index
    %c0_0 = arith.constant 0 : index
    %0 = vector.load %arg1[%c0, %c0_0] : memref<8x32xf32, #tpu.memory_space<vmem>>, vector<8x32xf32>
    %c0_1 = arith.constant 0 : index
    %c0_2 = arith.constant 0 : index
    %1 = vector.load %arg2[%c0_1, %c0_2] : memref<32x256xf32, #tpu.memory_space<vmem>>, vector<32x256xf32>
    %cst = arith.constant dense<0.000000e+00> : vector<8x256xf32>
    %2 = tpu.matmul %0, %1, %cst {dimension_numbers = #tpu.dot_dimension_numbers<[1], [0], [0], [1], [0, 0, 1, 1], [], []>} : vector<8x32xf32>, vector<32x256xf32>, vector<8x256xf32> -> vector<8x256xf32>
    %c0_3 = arith.constant 0 : index
    %c0_4 = arith.constant 0 : index
    %3 = vector.load %arg3[%c0_3, %c0_4] : memref<1x256xf32, #tpu.memory_space<vmem>>, vector<1x256xf32>
    %4 = vector.broadcast %3 : vector<1x256xf32> to vector<8x256xf32>
    %5 = arith.addf %2, %4 : vector<8x256xf32>
    %6 = vector.extract_strided_slice %5 {offsets = [0, 0], sizes = [8, 128], strides = [1, 1]} : vector<8x256xf32> to vector<8x128xf32>
    %cst_5 = arith.constant 0.000000e+00 : f32
    %7 = vector.broadcast %cst_5 : f32 to vector<8x128xf32>
    %8 = arith.maximumf %6, %7 : vector<8x128xf32>
    %9 = vector.extract_strided_slice %5 {offsets = [0, 128], sizes = [8, 128], strides = [1, 1]} : vector<8x256xf32> to vector<8x128xf32>
    %c0_6 = arith.constant 0 : index
    %c0_7 = arith.constant 0 : index
    %10 = vector.load %arg4[%c0_6, %c0_7] : memref<128x128xf32, #tpu.memory_space<vmem>>, vector<128x128xf32>
    %cst_8 = arith.constant dense<0.000000e+00> : vector<8x128xf32>
    %11 = tpu.matmul %8, %10, %cst_8 {dimension_numbers = #tpu.dot_dimension_numbers<[1], [0], [0], [1], [0, 0, 1, 1], [], []>} : vector<8x128xf32>, vector<128x128xf32>, vector<8x128xf32> -> vector<8x128xf32>
    %c0_9 = arith.constant 0 : index
    %c0_10 = arith.constant 0 : index
    %12 = vector.load %arg5[%c0_9, %c0_10] : memref<1x128xf32, #tpu.memory_space<vmem>>, vector<1x128xf32>
    %13 = vector.broadcast %12 : vector<1x128xf32> to vector<8x128xf32>
    %14 = arith.addf %11, %13 : vector<8x128xf32>
    %cst_11 = arith.constant 0.000000e+00 : f32
    %15 = vector.broadcast %cst_11 : f32 to vector<8x128xf32>
    %16 = arith.maximumf %14, %15 : vector<8x128xf32>
    %c0_12 = arith.constant 0 : index
    %c0_13 = arith.constant 0 : index
    %17 = vector.load %arg6[%c0_12, %c0_13] : memref<128x128xf32, #tpu.memory_space<vmem>>, vector<128x128xf32>
    %cst_14 = arith.constant dense<0.000000e+00> : vector<8x128xf32>
    %18 = tpu.matmul %16, %17, %cst_14 {dimension_numbers = #tpu.dot_dimension_numbers<[1], [0], [0], [1], [0, 0, 1, 1], [], []>} : vector<8x128xf32>, vector<128x128xf32>, vector<8x128xf32> -> vector<8x128xf32>
    %c0_15 = arith.constant 0 : index
    %c0_16 = arith.constant 0 : index
    %19 = vector.load %arg7[%c0_15, %c0_16] : memref<1x128xf32, #tpu.memory_space<vmem>>, vector<1x128xf32>
    %20 = vector.broadcast %19 : vector<1x128xf32> to vector<8x128xf32>
    %21 = arith.addf %18, %20 : vector<8x128xf32>
    %cst_17 = arith.constant 0.000000e+00 : f32
    %22 = vector.broadcast %cst_17 : f32 to vector<8x128xf32>
    %23 = arith.maximumf %21, %22 : vector<8x128xf32>
    %24 = arith.addf %23, %9 : vector<8x128xf32>
    %25 = vector.extract_strided_slice %24 {offsets = [0, 0], sizes = [8, 16], strides = [1, 1]} : vector<8x128xf32> to vector<8x16xf32>
    %c0_18 = arith.constant 0 : index
    %c0_19 = arith.constant 0 : index
    %26 = vector.load %arg8[%c0_18, %c0_19] : memref<8x16xf32, #tpu.memory_space<vmem>>, vector<8x16xf32>
    tpu.vector_store %arg8[%c0_18, %c0_19], %25 {strides = array<i32>} : memref<8x16xf32, #tpu.memory_space<vmem>>, vector<8x16xf32>,
    return
  }
  func.func @transform_0(%arg0: i32) -> (i32, i32) {
    %c0_i32 = arith.constant 0 : i32
    %c0_i32_0 = arith.constant 0 : i32
    return %arg0, %c0_i32 : i32, i32
  }
  func.func @transform_1(%arg0: i32) -> (i32, i32) {
    %c0_i32 = arith.constant 0 : i32
    %c0_i32_0 = arith.constant 0 : i32
    %c0_i32_1 = arith.constant 0 : i32
    return %c0_i32, %c0_i32_0 : i32, i32
  }
  func.func @transform_2(%arg0: i32) -> (i32, i32) {
    %c0_i32 = arith.constant 0 : i32
    %c0_i32_0 = arith.constant 0 : i32
    %c0_i32_1 = arith.constant 0 : i32
    return %c0_i32, %c0_i32_0 : i32, i32
  }
  func.func @transform_3(%arg0: i32) -> (i32, i32) {
    %c0_i32 = arith.constant 0 : i32
    %c0_i32_0 = arith.constant 0 : i32
    %c0_i32_1 = arith.constant 0 : i32
    return %c0_i32, %c0_i32_0 : i32, i32
  }
  func.func @transform_4(%arg0: i32) -> (i32, i32) {
    %c0_i32 = arith.constant 0 : i32
    %c0_i32_0 = arith.constant 0 : i32
    %c0_i32_1 = arith.constant 0 : i32
    return %c0_i32, %c0_i32_0 : i32, i32
  }
  func.func @transform_5(%arg0: i32) -> (i32, i32) {
    %c0_i32 = arith.constant 0 : i32
    %c0_i32_0 = arith.constant 0 : i32
    %c0_i32_1 = arith.constant 0 : i32
    return %c0_i32, %c0_i32_0 : i32, i32
  }
  func.func @transform_6(%arg0: i32) -> (i32, i32) {
    %c0_i32 = arith.constant 0 : i32
    %c0_i32_0 = arith.constant 0 : i32
    %c0_i32_1 = arith.constant 0 : i32
    return %c0_i32, %c0_i32_0 : i32, i32
  }
  func.func @transform_7(%arg0: i32) -> (i32, i32) {
    %c0_i32 = arith.constant 0 : i32
    %c0_i32_0 = arith.constant 0 : i32
    return %arg0, %c0_i32 : i32, i32
  }
}

</mosaic_0001>

<bundles_post_ra>
// kernel: _proj_head_forward.1
= control target key start
LH: loop header
LB: loop body
LE: loop exit
PB: predicated region body
PF: predicated region fallthrough
CT: control target
= control target key end

     0   :  { %12 = vsyncpa [#allocation3], 0  ;;  %s511_s0 = inlined_call_operand.hbm [shape: f32[8,32], index: 0, kind: input, shape index: {}]   ;;  %s512_s1 = inlined_call_operand.hbm [shape: f32[32,256], index: 1, kind: input, shape index: {}]   ;;  %s513_s2 = inlined_call_operand.hbm [shape: f32[1,256], index: 2, kind: input, shape index: {}]   ;;  %s514_s3 = inlined_call_operand.hbm [shape: f32[128,128], index: 3, kind: input, shape index: {}]   ;;  %s515_s4 = inlined_call_operand.vmem [shape: f32[1,128], index: 4, kind: input, shape index: {}]   ;;  %s516_s5 = inlined_call_operand.hbm [shape: f32[128,128], index: 5, kind: input, shape index: {}]   ;;  %s517_s6 = inlined_call_operand.vmem [shape: f32[1,128], index: 6, kind: input, shape index: {}]   ;;  %s518_s7 = inlined_call_operand.hbm [shape: f32[8,16], index: 7, kind: output, shape index: {}]  }
   0x1   :  { %13 = vsyncpa [#allocation6], 0 }
   0x2   :  { %14 = vsyncpa [#allocation9], 0  ;;  %s31_s26 = sshll.u32 %s512_s1, 4  ;;  %s32_s26 = int_to_ptr.hbm [resolvable:$true] %s31_s26 }
   0x3   :  { %15 = vsyncpa [#allocation4], 0  ;;  %s431_s27 = smov [#allocation5]   ;;  %s55_s8 = sshll.u32 %s514_s3, 4  ;;  %s56_s8 = int_to_ptr.hbm [resolvable:$true] %s55_s8 }
   0x4   :  { %s33_s28 = sshll.u32 %s431_s27, 4  ;;  %s432_s9 = smov 256   ;;  %s34_s28 = int_to_ptr.vmem [resolvable:$true] %s33_s28 }
   0x5   :  { %s433_s10 = smov 16   ;;  %s434_s11 = smov [#allocation8]  }
   0x6   :  { %39 = dma.hbm_to_vmem [thread:$0]  %s32_s26, 1024, %s34_s28, [#allocation6], %s432_s9, %s432_s9, %s433_s10  }
   0x7   :  { %s57_s12 = sshll.u32 %s434_s11, 4  ;;  %s435_s13 = smov 128   ;;  %s58_s12 = int_to_ptr.vmem [resolvable:$true] %s57_s12 }
   0x8   :  { %s436_s14 = smov 8   ;;  %s21_s16 = sshll.u32 %s511_s0, 4  ;;  %s22_s16 = int_to_ptr.hbm [resolvable:$true] %s21_s16 }
   0x9   :  { %63 = dma.hbm_to_vmem [thread:$0]  %s56_s8, 2048, %s58_s12, [#allocation9], %s435_s13, %s435_s13, %s436_s14  }
   0xa   :  { %s437_s17 = smov [#allocation2]   ;;  %s45_s20 = sshll.u32 %s513_s2, 4  ;;  %s46_s20 = int_to_ptr.hbm [resolvable:$true] %s45_s20 }
   0xb   :  { %s23_s18 = sshll.u32 %s437_s17, 4  ;;  %s438_s21 = smov [#allocation7]   ;;  %s24_s18 = int_to_ptr.vmem [resolvable:$true] %s23_s18 }
   0xc   :  { %26 = dma.hbm_to_vmem [thread:$0]  %s22_s16, 128, %s24_s18, [#allocation3]  }
   0xd   :  { %s47_s22 = sshll.u32 %s438_s21, 4  ;;  %s70_s25 = sshll.u32 %s516_s5, 4  ;;  %s48_s22 = int_to_ptr.vmem [resolvable:$true] %s47_s22  ;;  %s71_s25 = int_to_ptr.hbm [resolvable:$true] %s70_s25 }
   0xe   :  { %50 = dma.hbm_to_vmem [thread:$0]  %s46_s20, 32, %s48_s22, [#allocation6]  }
   0xf   :  { %s439_s0 = smov [#allocation10]  }
  0x10   :  { %s72_s26 = sshll.u32 %s439_s0, 4  ;;  %s73_s26 = int_to_ptr.vmem [resolvable:$true] %s72_s26 }
  0x11   :  { %78 = dma.hbm_to_vmem [thread:$0]  %s71_s25, 2048, %s73_s26, [#allocation9], %s435_s13, %s435_s13, %s436_s14  }
  0x12   :  { %423 = dma.done.wait [#allocation3], 128  }
  0x13   :  { %424 = vsyncadd [#allocation3], 4294967168 }
  0x14   :  { %425 = dma.done.wait [#allocation6], 1056  }
  0x15   :  { %426 = vsyncadd [#allocation6], 4294966240 }
  0x16   :  { %427 = dma.done.wait [#allocation9], 4096  }
  0x17   :  { %428 = vsyncadd [#allocation9], 4294963200  ;;  %v108_v0 = vld [vmem:[#allocation5 + $0x30] sm:$0xff]  ;;  %v106_v1 = vld [vmem:[#allocation5 + $0x20] sm:$0xff]  ;;  %vm116_vm0 = vcmask 261120   ;;  %s440_s29 = smov [#allocation11]  }
  0x18   :  { %132 = vmatpush.msra.mxu0 %v108_v0  ;;  %v176_v2 = vld [vmem:[#allocation8 + $0x78] sm:$0xff]  ;;  %v104_v3 = vld [vmem:[#allocation5 + $0x10] sm:$0xff]  ;;  %v173_v8 = vld [vmem:[#allocation8 + $0x60] sm:$0xff]  ;;  %s251_s30 = sshll.u32 %s440_s29, 4  ;;  %s253_s10 = sshll.u32 %s518_s7, 4  ;;  %vm244_vm1 = vcmask 130048   ;;  %s252_s30 = int_to_ptr.vmem [resolvable:$true] %s251_s30  ;;  %s254_s10 = int_to_ptr.hbm [resolvable:$true] %s253_s10 }
  0x19   :  { %181 = vmatpush.msra.mxu2 %v176_v2  ;;  %v175_v4 = vld [vmem:[#allocation8 + $0x70] sm:$0xff]  ;;  %v174_v5 = vld [vmem:[#allocation8 + $0x68] sm:$0xff]  ;;  %v102_v6 = vld [vmem:[#allocation5] sm:$0xff] }
  0x1a   :  { %133 = vmatpush.msra.mxu0 %v106_v1  ;;  %v496_v7 = vld [vmem:[#allocation2] sm:$0xff]  ;;  %v170_v11 = vld [vmem:[#allocation8 + $0x48] sm:$0xff]  ;;  %v169_v12 = vld [vmem:[#allocation8 + $0x40] sm:$0xff] }
  0x1b   :  { %182 = vmatpush.msra.mxu2 %v175_v4  ;;  %v172_v9 = vld [vmem:[#allocation8 + $0x58] sm:$0xff]  ;;  %v171_v10 = vld [vmem:[#allocation8 + $0x50] sm:$0xff]  ;;  %v166_v15 = vld [vmem:[#allocation8 + $0x28] sm:$0xff] }
  0x1c   :  { %134 = vmatpush.msra.mxu0 %v104_v3  ;;  %v168_v13 = vld [vmem:[#allocation8 + $0x38] sm:$0xff]  ;;  %v167_v14 = vld [vmem:[#allocation8 + $0x30] sm:$0xff]  ;;  %v165_v16 = vld [vmem:[#allocation8 + $0x20] sm:$0xff] }
  0x1d   :  { %183 = vmatpush.msra.mxu2 %v174_v5  ;;  %v164_v17 = vld [vmem:[#allocation8 + $0x18] sm:$0xff]  ;;  %v163_v18 = vld [vmem:[#allocation8 + $0x10] sm:$0xff]  ;;  %v162_v19 = vld [vmem:[#allocation8 + $0x8] sm:$0xff] }
  0x1e   :  { %135 = vmatpush.msra.mxu0 %v102_v6  ;;  %v161_v20 = vld [vmem:[#allocation8] sm:$0xff]  ;;  %v217_v21 = vld [vmem:[#allocation10 + $0x78] sm:$0xff]  ;;  %v216_v22 = vld [vmem:[#allocation10 + $0x70] sm:$0xff] }
  0x1f   :  { %265 = vmatmul.msk.f32.vlgmr.msra.gmra.mxu0 %vm116_vm0, %v496_v7  ;;  %184 = vmatpush.msra.mxu2 %v173_v8  ;;  %v215_v23 = vld [vmem:[#allocation10 + $0x68] sm:$0xff]  ;;  %v214_v24 = vld [vmem:[#allocation10 + $0x60] sm:$0xff]  ;;  %v213_v25 = vld [vmem:[#allocation10 + $0x58] sm:$0xff] }
  0x20   :  { %222 = vmatpush.msra.mxu3 %v217_v21  ;;  %v212_v26 = vld [vmem:[#allocation10 + $0x50] sm:$0xff]  ;;  %v211_v27 = vld [vmem:[#allocation10 + $0x48] sm:$0xff]  ;;  %v210_v28 = vld [vmem:[#allocation10 + $0x40] sm:$0xff] }
  0x21   :  { %185 = vmatpush.msra.mxu2 %v172_v9  ;;  %v209_v29 = vld [vmem:[#allocation10 + $0x38] sm:$0xff]  ;;  %v208_v30 = vld [vmem:[#allocation10 + $0x30] sm:$0xff]  ;;  %v207_v31 = vld [vmem:[#allocation10 + $0x28] sm:$0xff] }
  0x22   :  { %223 = vmatpush.msra.mxu3 %v216_v22  ;;  %v206_v32 = vld [vmem:[#allocation10 + $0x20] sm:$0xff]  ;;  %v110_v33 = vld [vmem:[#allocation7] sm:$0x3]  ;;  %v204_v39 = vld [vmem:[#allocation10 + $0x10] sm:$0xff] }
  0x23   :  { %186 = vmatpush.msra.mxu2 %v171_v10  ;;  %v205_v34 = vld [vmem:[#allocation10 + $0x18] sm:$0xff]  ;;  %v112_v35 = vperm.slane %v110_v33, 0  ;;  %v203_v40 = vld [vmem:[#allocation10 + $0x8] sm:$0xff]  ;;  %v202_v41 = vld [vmem:[#allocation10] sm:$0xff]  ;;  %v113_v51 = vperm.slane %v110_v33, 1 }
  0x24   :  { %224 = vmatpush.msra.mxu3 %v215_v23  ;;  %v109_v42 = vld [vmem:[#allocation5 + $0x38] sm:$0xff]  ;;  %v107_v43 = vld [vmem:[#allocation5 + $0x28] sm:$0xff] }
  0x25   :  { %187 = vmatpush.msra.mxu2 %v170_v11  ;;  %152 = vmatpush.msra.mxu1 %v109_v42  ;;  %v105_v44 = vld [vmem:[#allocation5 + $0x18] sm:$0xff]  ;;  %v103_v45 = vld [vmem:[#allocation5 + $0x8] sm:$0xff] }
  0x26   :  { %225 = vmatpush.msra.mxu3 %v214_v24  ;;  %v277_v46 = vld [vmem:[%s515_s4] ss:$0 sm:$0xff] }
  0x27   :  { %188 = vmatpush.msra.mxu2 %v169_v12  ;;  %153 = vmatpush.msra.mxu1 %v107_v43  ;;  %v278_v50 = vld [vmem:[%s517_s6] ss:$0 sm:$0xff] }
  0x28   :  { %226 = vmatpush.msra.mxu3 %v213_v25 }
  0x29   :  { %189 = vmatpush.msra.mxu2 %v168_v13  ;;  %154 = vmatpush.msra.mxu1 %v105_v44 }
  0x2a   :  { %227 = vmatpush.msra.mxu3 %v212_v26 }
  0x2b   :  { %190 = vmatpush.msra.mxu2 %v167_v14  ;;  %155 = vmatpush.msra.mxu1 %v103_v45 }
  0x2c   :  { %228 = vmatpush.msra.mxu3 %v211_v27  ;;  %266 = vmatmul.msk.f32.vlgmr.msra.gmra.mxu1 %vm116_vm0, %v496_v7 }
  0x2d   :  { %191 = vmatpush.msra.mxu2 %v166_v15 }
  0x2e   :  { %229 = vmatpush.msra.mxu3 %v210_v28 }
  0x2f   :  { %192 = vmatpush.msra.mxu2 %v165_v16 }
  0x30   :  { %230 = vmatpush.msra.mxu3 %v209_v29 }
  0x31   :  { %193 = vmatpush.msra.mxu2 %v164_v17 }
  0x32   :  { %231 = vmatpush.msra.mxu3 %v208_v30 }
  0x33   :  { %194 = vmatpush.msra.mxu2 %v163_v18 }
  0x34   :  { %232 = vmatpush.msra.mxu3 %v207_v31 }
  0x35   :  { %195 = vmatpush.msra.mxu2 %v162_v19 }
  0x36   :  { %233 = vmatpush.msra.mxu3 %v206_v32 }
  0x37   :  { %196 = vmatpush.msra.mxu2 %v161_v20 }
  0x38   :  { %234 = vmatpush.msra.mxu3 %v205_v34 }
  0x3a   :  { %235 = vmatpush.msra.mxu3 %v204_v39 }
  0x3c   :  { %236 = vmatpush.msra.mxu3 %v203_v40 }
  0x3e   :  { %237 = vmatpush.msra.mxu3 %v202_v41 }
  0x9c   :  { %v137_v36 = vpop.f32.mrf.mxu0 }
  0x9d   :  { %v138_v37 = vadd.f32 %v137_v36, %v112_v35 }
  0x9f   :  { %v160_v38 = vmax.f32 %v138_v37, 0.0 }
  0xa1   :  { %197 = vmatmul.f32.vlgmr.msra.gmra.mxu2 %v160_v38 }
  0xa9   :  { %v157_v52 = vpop.f32.mrf.mxu1 }
  0xaa   :  { %v158_v55 = vadd.f32 %v157_v52, %v113_v51 }
 0x124   :  { %v198_v47 = vpop.f32.mrf.mxu2 }
 0x125   :  { %v199_v48 = vadd.f32 %v277_v46, %v198_v47 }
 0x127   :  { %v201_v49 = vmax.f32 %v199_v48, 0.0 }
 0x129   :  { %238 = vmatmul.f32.vlgmr.msra.gmra.mxu3 %v201_v49 }
 0x1ac   :  { %v239_v53 = vpop.f32.mrf.mxu3 }
 0x1ad   :  { %v240_v54 = vadd.f32 %v278_v50, %v239_v53 }
 0x1af   :  { %v242_v56 = vmax.f32 %v240_v54, 0.0 }
 0x1b1   :  { %v243_v57 = vadd.f32 %v242_v56, %v158_v55 }
 0x1b3   :  { %245 = vst.msk [vmem:[#allocation11] sm:$0xff] %vm244_vm1, %v243_v57 }
 0x1b4   :  { %256 = dma.vmem_to_hbm [thread:$0]  %s252_s30, 128, %s254_s10, [#allocation4]  }
 0x1b5   :  { %429 = dma.done.wait [#allocation4], 128  }
 0x1b6   :  { %430 = vsyncadd [#allocation4], 4294967168 }
 0x1b7   :  { %261 = vsyncpa [#allocation3], 1 }
 0x1b8   :  { %262 = vsyncpa [#allocation6], 1 }
 0x1b9   :  { %263 = vsyncpa [#allocation9], 1 }
 0x1ba   :  { %264 = vsyncpa [#allocation4], 1 }

// kernel: _proj_head_forward.1
= control target key start
LH: loop header
LB: loop body
LE: loop exit
PB: predicated region body
PF: predicated region fallthrough
CT: control target
= control target key end

     0   :  { %12 = vsyncpa [#allocation3], 0  ;;  %s511_s0 = inlined_call_operand.hbm [shape: f32[8,32], index: 0, kind: input, shape index: {}]   ;;  %s512_s1 = inlined_call_operand.hbm [shape: f32[32,256], index: 1, kind: input, shape index: {}]   ;;  %s513_s2 = inlined_call_operand.hbm [shape: f32[1,256], index: 2, kind: input, shape index: {}]   ;;  %s514_s3 = inlined_call_operand.hbm [shape: f32[128,128], index: 3, kind: input, shape index: {}]   ;;  %s515_s4 = inlined_call_operand.vmem [shape: f32[1,128], index: 4, kind: input, shape index: {}]   ;;  %s516_s5 = inlined_call_operand.hbm [shape: f32[128,128], index: 5, kind: input, shape index: {}]   ;;  %s517_s6 = inlined_call_operand.vmem [shape: f32[1,128], index: 6, kind: input, shape index: {}]   ;;  %s518_s7 = inlined_call_operand.hbm [shape: f32[8,16], index: 7, kind: output, shape index: {}]  }
   0x1   :  { %13 = vsyncpa [#allocation6], 0 }
   0x2   :  { %14 = vsyncpa [#allocation9], 0  ;;  %s31_s26 = sshll.u32 %s512_s1, 4  ;;  %s32_s26 = int_to_ptr.hbm [resolvable:$true] %s31_s26 }
   0x3   :  { %15 = vsyncpa [#allocation4], 0  ;;  %s431_s27 = smov [#allocation5]   ;;  %s55_s8 = sshll.u32 %s514_s3, 4  ;;  %s56_s8 = int_to_ptr.hbm [resolvable:$true] %s55_s8 }
   0x4   :  { %s33_s28 = sshll.u32 %s431_s27, 4  ;;  %s432_s9 = smov 256   ;;  %s34_s28 = int_to_ptr.vmem [resolvable:$true] %s33_s28 }
   0x5   :  { %s433_s10 = smov 16   ;;  %s434_s11 = smov [#allocation8]  }
   0x6   :  { %39 = dma.hbm_to_vmem [thread:$0]  %s32_s26, 1024, %s34_s28, [#allocation6], %s432_s9, %s432_s9, %s433_s10  }
   0x7   :  { %s57_s12 = sshll.u32 %s434_s11, 4  ;;  %s435_s13 = smov 128   ;;  %s58_s12 = int_to_ptr.vmem [resolvable:$true] %s57_s12 }
   0x8   :  { %s436_s14 = smov 8   ;;  %s21_s16 = sshll.u32 %s511_s0, 4  ;;  %s22_s16 = int_to_ptr.hbm [resolvable:$true] %s21_s16 }
   0x9   :  { %63 = dma.hbm_to_vmem [thread:$0]  %s56_s8, 2048, %s58_s12, [#allocation9], %s435_s13, %s435_s13, %s436_s14  }
   0xa   :  { %s437_s17 = smov [#allocation2]   ;;  %s45_s20 = sshll.u32 %s513_s2, 4  ;;  %s46_s20 = int_to_ptr.hbm [resolvable:$true] %s45_s20 }
   0xb   :  { %s23_s18 = sshll.u32 %s437_s17, 4  ;;  %s438_s21 = smov [#allocation7]   ;;  %s24_s18 = int_to_ptr.vmem [resolvable:$true] %s23_s18 }
   0xc   :  { %26 = dma.hbm_to_vmem [thread:$0]  %s22_s16, 128, %s24_s18, [#allocation3]  }
   0xd   :  { %s47_s22 = sshll.u32 %s438_s21, 4  ;;  %s70_s25 = sshll.u32 %s516_s5, 4  ;;  %s48_s22 = int_to_ptr.vmem [resolvable:$true] %s47_s22  ;;  %s71_s25 = int_to_ptr.hbm [resolvable:$true] %s70_s25 }
   0xe   :  { %50 = dma.hbm_to_vmem [thread:$0]  %s46_s20, 32, %s48_s22, [#allocation6]  }
   0xf   :  { %s439_s0 = smov [#allocation10]  }
  0x10   :  { %s72_s26 = sshll.u32 %s439_s0, 4  ;;  %s73_s26 = int_to_ptr.vmem [resolvable:$true] %s72_s26 }
  0x11   :  { %78 = dma.hbm_to_vmem [thread:$0]  %s71_s25, 2048, %s73_s26, [#allocation9], %s435_s13, %s435_s13, %s436_s14  }
  0x12   :  { %423 = dma.done.wait [#allocation3], 128  }
  0x13   :  { %424 = vsyncadd [#allocation3], 4294967168 }
  0x14   :  { %425 = dma.done.wait [#allocation6], 1056  }
  0x15   :  { %426 = vsyncadd [#allocation6], 4294966240 }
  0x16   :  { %427 = dma.done.wait [#allocation9], 4096  }
  0x17   :  { %428 = vsyncadd [#allocation9], 4294963200  ;;  %v108_v0 = vld [vmem:[#allocation5 + $0x30] sm:$0xff]  ;;  %v106_v1 = vld [vmem:[#allocation5 + $0x20] sm:$0xff]  ;;  %vm116_vm0 = vcmask 261120   ;;  %s440_s29 = smov [#allocation11]  }
  0x18   :  { %132 = vmatpush.msra.mxu0 %v108_v0  ;;  %v176_v2 = vld [vmem:[#allocation8 + $0x78] sm:$0xff]  ;;  %v104_v3 = vld [vmem:[#allocation5 + $0x10] sm:$0xff]  ;;  %v173_v8 = vld [vmem:[#allocation8 + $0x60] sm:$0xff]  ;;  %s251_s30 = sshll.u32 %s440_s29, 4  ;;  %s253_s10 = sshll.u32 %s518_s7, 4  ;;  %vm244_vm1 = vcmask 130048   ;;  %s252_s30 = int_to_ptr.vmem [resolvable:$true] %s251_s30  ;;  %s254_s10 = int_to_ptr.hbm [resolvable:$true] %s253_s10 }
  0x19   :  { %181 = vmatpush.msra.mxu2 %v176_v2  ;;  %v175_v4 = vld [vmem:[#allocation8 + $0x70] sm:$0xff]  ;;  %v174_v5 = vld [vmem:[#allocation8 + $0x68] sm:$0xff]  ;;  %v102_v6 = vld [vmem:[#allocation5] sm:$0xff] }
  0x1a   :  { %133 = vmatpush.msra.mxu0 %v106_v1  ;;  %v496_v7 = vld [vmem:[#allocation2] sm:$0xff]  ;;  %v170_v11 = vld [vmem:[#allocation8 + $0x48] sm:$0xff]  ;;  %v169_v12 = vld [vmem:[#allocation8 + $0x40] sm:$0xff] }
  0x1b   :  { %182 = vmatpush.msra.mxu2 %v175_v4  ;;  %v172_v9 = vld [vmem:[#allocation8 + $0x58] sm:$0xff]  ;;  %v171_v10 = vld [vmem:[#allocation8 + $0x50] sm:$0xff]  ;;  %v166_v15 = vld [vmem:[#allocation8 + $0x28] sm:$0xff] }
  0x1c   :  { %134 = vmatpush.msra.mxu0 %v104_v3  ;;  %v168_v13 = vld [vmem:[#allocation8 + $0x38] sm:$0xff]  ;;  %v167_v14 = vld [vmem:[#allocation8 + $0x30] sm:$0xff]  ;;  %v165_v16 = vld [vmem:[#allocation8 + $0x20] sm:$0xff] }
  0x1d   :  { %183 = vmatpush.msra.mxu2 %v174_v5  ;;  %v164_v17 = vld [vmem:[#allocation8 + $0x18] sm:$0xff]  ;;  %v163_v18 = vld [vmem:[#allocation8 + $0x10] sm:$0xff]  ;;  %v162_v19 = vld [vmem:[#allocation8 + $0x8] sm:$0xff] }
  0x1e   :  { %135 = vmatpush.msra.mxu0 %v102_v6  ;;  %v161_v20 = vld [vmem:[#allocation8] sm:$0xff]  ;;  %v217_v21 = vld [vmem:[#allocation10 + $0x78] sm:$0xff]  ;;  %v216_v22 = vld [vmem:[#allocation10 + $0x70] sm:$0xff] }
  0x1f   :  { %265 = vmatmul.msk.f32.vlgmr.msra.gmra.mxu0 %vm116_vm0, %v496_v7  ;;  %184 = vmatpush.msra.mxu2 %v173_v8  ;;  %v215_v23 = vld [vmem:[#allocation10 + $0x68] sm:$0xff]  ;;  %v214_v24 = vld [vmem:[#allocation10 + $0x60] sm:$0xff]  ;;  %v213_v25 = vld [vmem:[#allocation10 + $0x58] sm:$0xff] }
  0x20   :  { %222 = vmatpush.msra.mxu3 %v217_v21  ;;  %v212_v26 = vld [vmem:[#allocation10 + $0x50] sm:$0xff]  ;;  %v211_v27 = vld [vmem:[#allocation10 + $0x48] sm:$0xff]  ;;  %v210_v28 = vld [vmem:[#allocation10 + $0x40] sm:$0xff] }
  0x21   :  { %185 = vmatpush.msra.mxu2 %v172_v9  ;;  %v209_v29 = vld [vmem:[#allocation10 + $0x38] sm:$0xff]  ;;  %v208_v30 = vld [vmem:[#allocation10 + $0x30] sm:$0xff]  ;;  %v207_v31 = vld [vmem:[#allocation10 + $0x28] sm:$0xff] }
  0x22   :  { %223 = vmatpush.msra.mxu3 %v216_v22  ;;  %v206_v32 = vld [vmem:[#allocation10 + $0x20] sm:$0xff]  ;;  %v110_v33 = vld [vmem:[#allocation7] sm:$0x3]  ;;  %v204_v39 = vld [vmem:[#allocation10 + $0x10] sm:$0xff] }
  0x23   :  { %186 = vmatpush.msra.mxu2 %v171_v10  ;;  %v205_v34 = vld [vmem:[#allocation10 + $0x18] sm:$0xff]  ;;  %v112_v35 = vperm.slane %v110_v33, 0  ;;  %v203_v40 = vld [vmem:[#allocation10 + $0x8] sm:$0xff]  ;;  %v202_v41 = vld [vmem:[#allocation10] sm:$0xff]  ;;  %v113_v51 = vperm.slane %v110_v33, 1 }
  0x24   :  { %224 = vmatpush.msra.mxu3 %v215_v23  ;;  %v109_v42 = vld [vmem:[#allocation5 + $0x38] sm:$0xff]  ;;  %v107_v43 = vld [vmem:[#allocation5 + $0x28] sm:$0xff] }
  0x25   :  { %187 = vmatpush.msra.mxu2 %v170_v11  ;;  %152 = vmatpush.msra.mxu1 %v109_v42  ;;  %v105_v44 = vld [vmem:[#allocation5 + $0x18] sm:$0xff]  ;;  %v103_v45 = vld [vmem:[#allocation5 + $0x8] sm:$0xff] }
  0x26   :  { %225 = vmatpush.msra.mxu3 %v214_v24  ;;  %v277_v46 = vld [vmem:[%s515_s4] ss:$0 sm:$0xff] }
  0x27   :  { %188 = vmatpush.msra.mxu2 %v169_v12  ;;  %153 = vmatpush.msra.mxu1 %v107_v43  ;;  %v278_v50 = vld [vmem:[%s517_s6] ss:$0 sm:$0xff] }
  0x28   :  { %226 = vmatpush.msra.mxu3 %v213_v25 }
  0x29   :  { %189 = vmatpush.msra.mxu2 %v168_v13  ;;  %154 = vmatpush.msra.mxu1 %v105_v44 }
  0x2a   :  { %227 = vmatpush.msra.mxu3 %v212_v26 }
  0x2b   :  { %190 = vmatpush.msra.mxu2 %v167_v14  ;;  %155 = vmatpush.msra.mxu1 %v103_v45 }
  0x2c   :  { %228 = vmatpush.msra.mxu3 %v211_v27  ;;  %266 = vmatmul.msk.f32.vlgmr.msra.gmra.mxu1 %vm116_vm0, %v496_v7 }
  0x2d   :  { %191 = vmatpush.msra.mxu2 %v166_v15 }
  0x2e   :  { %229 = vmatpush.msra.mxu3 %v210_v28 }
  0x2f   :  { %192 = vmatpush.msra.mxu2 %v165_v16 }
  0x30   :  { %230 = vmatpush.msra.mxu3 %v209_v29 }
  0x31   :  { %193 = vmatpush.msra.mxu2 %v164_v17 }
  0x32   :  { %231 = vmatpush.msra.mxu3 %v208_v30 }
  0x33   :  { %194 = vmatpush.msra.mxu2 %v163_v18 }
  0x34   :  { %232 = vmatpush.msra.mxu3 %v207_v31 }
  0x35   :  { %195 = vmatpush.msra.mxu2 %v162_v19 }
  0x36   :  { %233 = vmatpush.msra.mxu3 %v206_v32 }
  0x37   :  { %196 = vmatpush.msra.mxu2 %v161_v20 }
  0x38   :  { %234 = vmatpush.msra.mxu3 %v205_v34 }
  0x3a   :  { %235 = vmatpush.msra.mxu3 %v204_v39 }
  0x3c   :  { %236 = vmatpush.msra.mxu3 %v203_v40 }
  0x3e   :  { %237 = vmatpush.msra.mxu3 %v202_v41 }
  0x9c   :  { %v137_v36 = vpop.f32.mrf.mxu0 }
  0x9d   :  { %v138_v37 = vadd.f32 %v137_v36, %v112_v35 }
  0x9f   :  { %v160_v38 = vmax.f32 %v138_v37, 0.0 }
  0xa1   :  { %197 = vmatmul.f32.vlgmr.msra.gmra.mxu2 %v160_v38 }
  0xa9   :  { %v157_v52 = vpop.f32.mrf.mxu1 }
  0xaa   :  { %v158_v55 = vadd.f32 %v157_v52, %v113_v51 }
 0x124   :  { %v198_v47 = vpop.f32.mrf.mxu2 }
 0x125   :  { %v199_v48 = vadd.f32 %v277_v46, %v198_v47 }
 0x127   :  { %v201_v49 = vmax.f32 %v199_v48, 0.0 }
 0x129   :  { %238 = vmatmul.f32.vlgmr.msra.gmra.mxu3 %v201_v49 }
 0x1ac   :  { %v239_v53 = vpop.f32.mrf.mxu3 }
 0x1ad   :  { %v240_v54 = vadd.f32 %v278_v50, %v239_v53 }
 0x1af   :  { %v242_v56 = vmax.f32 %v240_v54, 0.0 }
 0x1b1   :  { %v243_v57 = vadd.f32 %v242_v56, %v158_v55 }
 0x1b3   :  { %245 = vst.msk [vmem:[#allocation11] sm:$0xff] %vm244_vm1, %v243_v57 }
 0x1b4   :  { %256 = dma.vmem_to_hbm [thread:$0]  %s252_s30, 128, %s254_s10, [#allocation4]  }
 0x1b5   :  { %429 = dma.done.wait [#allocation4], 128  }
 0x1b6   :  { %430 = vsyncadd [#allocation4], 4294967168 }
 0x1b7   :  { %261 = vsyncpa [#allocation3], 1 }
 0x1b8   :  { %262 = vsyncpa [#allocation6], 1 }
 0x1b9   :  { %263 = vsyncpa [#allocation9], 1 }
 0x1ba   :  { %264 = vsyncpa [#allocation4], 1 }

</bundles_post_ra>
